<compile_context>
chip_gen: v7x
topology: tpu7x:2x2x1
jax: 0.10.0
libtpu: 0.0.40
codegen_flags: <defaults>
</compile_context>

<pallas_src>
from functools import partial

import jax
import jax.numpy as jnp
from jax.experimental import pallas as pl
from jax.experimental.pallas import tpu as pltpu

# ---------------- model config (small, consistent with the module) ----------
BATCH = 8
INPUT_SIZE = 16
HIDDEN_SIZE = 32
NUM_LAYERS = 2          # kernel below is written for exactly 2 layers
OUT_FEATURES = 4

MAX_TILE_N = 4096       # rows per grid step ceiling (amortizes step overhead)
MIN_TILES = 4           # >= 2 grid steps for v7x's 2 TCs + pipeline overlap


# ---------------------------- Pallas kernel ---------------------------------
def _fedplstm_kernel(x_ref, wih0_ref, b0_ref, wih1_ref, b1_ref,
                     wfc1_ref, bfc1_ref, wfc_ref, bfc_ref, o_ref,
                     *, hidden_size):
    H = hidden_size
    f32 = jnp.float32
    bf16 = jnp.bfloat16

    def lstm_cell(inp_bf16, w_ih_ref, b_ref):
        # seq_len == 1, h0 == c0 == 0:
        #   - recurrent matmul h_prev @ W_hh contributes exactly zero (skipped)
        #   - forget gate multiplies c_prev == 0; its columns were pruned in
        #     the wrapper.  Remaining gate column order: i | o | g, so both
        #     sigmoids run as ONE 64-lane EUP call.
        gates = jnp.dot(inp_bf16, w_ih_ref[...],
                        preferred_element_type=f32) + b_ref[...]
        sig = jax.nn.sigmoid(gates[:, :2 * H])        # i | o together
        i_g = sig[:, :H]
        o_g = sig[:, H:2 * H]
        g_g = jnp.tanh(gates[:, 2 * H:3 * H])
        return o_g * jnp.tanh(i_g * g_g)               # h (f32)

    # cast f32 input to bf16 in-kernel (VPU slot; avoids a wrapper HBM pass).
    x_bf = x_ref[...].astype(bf16)

    # stacked LSTM (2 layers); bf16 operands, f32 accumulate / elementwise.
    h = lstm_cell(x_bf, wih0_ref, b0_ref)
    h = lstm_cell(h.astype(bf16), wih1_ref, b1_ref)

    # fc_1 -> relu -> fc_1 (same weights twice, per the module) -> relu
    # -> fc -> sigmoid (only on the OUT_FEATURES valid lanes).
    w1 = wfc1_ref[...]
    b_1 = bfc1_ref[...]
    out = jnp.maximum(
        jnp.dot(h.astype(bf16), w1, preferred_element_type=f32) + b_1, 0.0)
    out = jnp.maximum(
        jnp.dot(out.astype(bf16), w1, preferred_element_type=f32) + b_1, 0.0)
    logits = jnp.dot(out.astype(bf16), wfc_ref[...],
                     preferred_element_type=f32) + bfc_ref[...]
    o_ref[...] = jax.nn.sigmoid(logits).astype(o_ref.dtype)


# ------------------------------- wrapper -------------------------------------
def _choose_tiling(n):
    """Size the grid first (>= MIN_TILES steps when possible), then the tile."""
    num_tiles = max(MIN_TILES, pl.cdiv(n, MAX_TILE_N))
    tile_n = max(8, ((pl.cdiv(n, num_tiles) + 7) // 8) * 8)
    num_tiles = pl.cdiv(n, tile_n)
    return tile_n, num_tiles, num_tiles * tile_n


def fedplstm_forward(x, params):
    """x: (N, input_size) float32. Returns (N, OUT_FEATURES) float32."""
    n, in_size = x.shape
    H = HIDDEN_SIZE

    tile_n, num_tiles, n_pad = _choose_tiling(n)
    if n_pad != n:
        x = jnp.pad(x, ((0, n_pad - n), (0, 0)))

    # ---- one-time parameter prep -------------------------------------------
    # Drop forget-gate columns and reorder PyTorch gate order i|f|g|o -> i|o|g.
    def prune_reorder(a):
        return jnp.concatenate(
            [a[..., 0 * H:1 * H], a[..., 3 * H:4 * H], a[..., 2 * H:3 * H]],
            axis=-1)

    w_ih0 = prune_reorder(params["w_ih0"]).astype(jnp.bfloat16)   # (I, 3H)
    b0 = prune_reorder(params["b0"]).astype(jnp.float32)          # (1, 3H)
    w_ih1 = prune_reorder(params["w_ih1"]).astype(jnp.bfloat16)   # (H, 3H)
    b1 = prune_reorder(params["b1"]).astype(jnp.float32)          # (1, 3H)
    w_fc1 = params["w_fc1"].astype(jnp.bfloat16)                  # (H, H)
    b_fc1 = params["b_fc1"].astype(jnp.float32)                   # (1, H)
    w_fc = params["w_fc"].astype(jnp.bfloat16)                    # (H, OUT)
    b_fc = params["b_fc"].astype(jnp.float32)                     # (1, OUT)

    def resident(arr):                     # weight stays in VMEM across tiles
        return pl.BlockSpec(arr.shape, lambda i: (0, 0))

    kernel = partial(_fedplstm_kernel, hidden_size=H)
    out = pl.pallas_call(
        kernel,
        out_shape=jax.ShapeDtypeStruct((n_pad, OUT_FEATURES), jnp.float32),
        grid=(num_tiles,),
        in_specs=[
            pl.BlockSpec((tile_n, in_size), lambda i: (i, 0)),   # x: streamed
            resident(w_ih0), resident(b0),
            resident(w_ih1), resident(b1),
            resident(w_fc1), resident(b_fc1),
            resident(w_fc), resident(b_fc),
        ],
        # compact output: last dim equals the full array dim (legal block),
        # HBM write is 16 B/row instead of a 512 B/row padded slab.
        out_specs=pl.BlockSpec((tile_n, OUT_FEATURES), lambda i: (i, 0)),
        compiler_params=pltpu.CompilerParams(
            dimension_semantics=("parallel",)),   # shards tiles across v7x TCs
    )(x, w_ih0, b0, w_ih1, b1, w_fc1, b_fc1, w_fc, b_fc)

    return out if n_pad == n else out[:n]


# ------------------------- parameter construction ---------------------------
def init_params(key):
    """Deterministic init mimicking PyTorch's uniform(-1/sqrt(fan), 1/sqrt(fan)).

    Weights are stored transposed vs. PyTorch, i.e. (in_features, out_features),
    so every projection is a plain row-major `x @ W + b`. LSTM biases are kept
    combined (b_ih + b_hh) since they always appear summed. Gate order is the
    PyTorch order i|f|g|o here; the wrapper prunes/reorders once.
    """
    ks = jax.random.split(key, 12)
    s = 1.0 / jnp.sqrt(HIDDEN_SIZE)

    def u(k, shape):
        return jax.random.uniform(k, shape, jnp.float32, -s, s)

    w_ih0 = u(ks[0], (INPUT_SIZE, 4 * HIDDEN_SIZE))
    b_ih0 = u(ks[1], (1, 4 * HIDDEN_SIZE))
    b_hh0 = u(ks[2], (1, 4 * HIDDEN_SIZE))
    w_ih1 = u(ks[3], (HIDDEN_SIZE, 4 * HIDDEN_SIZE))
    b_ih1 = u(ks[4], (1, 4 * HIDDEN_SIZE))
    b_hh1 = u(ks[5], (1, 4 * HIDDEN_SIZE))
    w_fc1 = u(ks[6], (HIDDEN_SIZE, HIDDEN_SIZE))
    b_fc1 = u(ks[7], (1, HIDDEN_SIZE))
    w_fc = u(ks[8], (HIDDEN_SIZE, OUT_FEATURES))
    b_fc = u(ks[9], (1, OUT_FEATURES))

    return {
        "w_ih0": w_ih0, "b0": b_ih0 + b_hh0,
        "w_ih1": w_ih1, "b1": b_ih1 + b_hh1,
        "w_fc1": w_fc1, "b_fc1": b_fc1,
        "w_fc": w_fc, "b_fc": b_fc,
    }


# --------------------------- pure-JAX reference ------------------------------
def fedplstm_ref(x, p, *, mxu_dtype=jnp.float32):
    """Reference using the full (unpruned) PyTorch-layout params.

    mxu_dtype=jnp.bfloat16 reproduces the kernel's precision recipe
    (bf16 operands, f32 accumulation, f32 elementwise math).
    """
    H = HIDDEN_SIZE

    def dot(a, w):
        return jnp.dot(a.astype(mxu_dtype), w.astype(mxu_dtype),
                       preferred_element_type=jnp.float32)

    def cell(inp, w, b):
        g = dot(inp, w) + b
        i = jax.nn.sigmoid(g[:, 0 * H:1 * H])
        # forget gate multiplies c_prev == 0 -> no contribution
        gg = jnp.tanh(g[:, 2 * H:3 * H])
        o = jax.nn.sigmoid(g[:, 3 * H:4 * H])
        return o * jnp.tanh(i * gg)

    h = cell(x, p["w_ih0"], p["b0"])
    h = cell(h, p["w_ih1"], p["b1"])
    out = jax.nn.relu(dot(h, p["w_fc1"]) + p["b_fc1"])
    out = jax.nn.relu(dot(out, p["w_fc1"]) + p["b_fc1"])
    return jax.nn.sigmoid(dot(out, p["w_fc"]) + p["b_fc"])


if __name__ == "__main__":
    key = jax.random.PRNGKey(0)
    k_x, k_p, k_x2 = jax.random.split(key, 3)
    params = init_params(k_p)

    # small shape consistent with the module (single tile path)
    x = jax.random.normal(k_x, (BATCH, INPUT_SIZE), jnp.float32)
    out = jax.block_until_ready(fedplstm_forward(x, params))
    assert out.shape == (BATCH, OUT_FEATURES), out.shape

    # Matched-precision reference (bf16 operands, f32 accumulate) -> tight.
    ref_matched = fedplstm_ref(x, params, mxu_dtype=jnp.bfloat16)
    err_m = float(jnp.max(jnp.abs(out - ref_matched)))
    assert err_m < 1e-4, f"matched-precision max abs err {err_m}"

    # Full-f32 reference -> sanity bound on the bf16 approximation error.
    ref_f32 = fedplstm_ref(x, params, mxu_dtype=jnp.float32)
    err_f = float(jnp.max(jnp.abs(out - ref_f32)))
    assert err_f < 3e-2, f"f32-reference max abs err {err_f}"

    # Multi-tile + padded-batch path (old pathology case n=1030): now tiles as
    # 4 x 264 rows (26 padded rows) instead of 2 x 1024 (1018 padded rows).
    x2 = jax.random.normal(k_x2, (1030, INPUT_SIZE), jnp.float32)
    out2 = jax.block_until_ready(fedplstm_forward(x2, params))
    assert out2.shape == (1030, OUT_FEATURES), out2.shape
    ref2 = fedplstm_ref(x2, params, mxu_dtype=jnp.bfloat16)
    err2 = float(jnp.max(jnp.abs(out2 - ref2)))
    assert err2 < 1e-4, f"multi-tile max abs err {err2}"

    print("KERNEL_OK")
</pallas_src>

<mosaic_0001>
module attributes {stable_mosaic.version = 11 : i64} {
  func.func @_fedplstm_kernel(%arg0: i32, %arg1: memref<8x16xf32, #tpu.memory_space<vmem>>, %arg2: memref<16x96xbf16, #tpu.memory_space<vmem>>, %arg3: memref<1x96xf32, #tpu.memory_space<vmem>>, %arg4: memref<32x96xbf16, #tpu.memory_space<vmem>>, %arg5: memref<1x96xf32, #tpu.memory_space<vmem>>, %arg6: memref<32x32xbf16, #tpu.memory_space<vmem>>, %arg7: memref<1x32xf32, #tpu.memory_space<vmem>>, %arg8: memref<32x4xbf16, #tpu.memory_space<vmem>>, %arg9: memref<1x4xf32, #tpu.memory_space<vmem>>, %arg10: memref<8x4xf32, #tpu.memory_space<vmem>>) attributes {dimension_semantics = [#tpu.dimension_semantics<parallel>], iteration_bounds = array<i64: 1>, scalar_prefetch = 0 : i64, scratch_operands = 0 : i64, tpu.core_type = #tpu.core_type<tc>, window_params = [{transform_indices = @transform_0, window_bounds = array<i64: 8, 16>}, {pipeline_mode = #tpu.pipeline_mode<synchronous>, transform_indices = @transform_1, window_bounds = array<i64: 16, 96>}, {pipeline_mode = #tpu.pipeline_mode<synchronous>, transform_indices = @transform_2, window_bounds = array<i64: 1, 96>}, {pipeline_mode = #tpu.pipeline_mode<synchronous>, transform_indices = @transform_3, window_bounds = array<i64: 32, 96>}, {pipeline_mode = #tpu.pipeline_mode<synchronous>, transform_indices = @transform_4, window_bounds = array<i64: 1, 96>}, {pipeline_mode = #tpu.pipeline_mode<synchronous>, transform_indices = @transform_5, window_bounds = array<i64: 32, 32>}, {pipeline_mode = #tpu.pipeline_mode<synchronous>, transform_indices = @transform_6, window_bounds = array<i64: 1, 32>}, {pipeline_mode = #tpu.pipeline_mode<synchronous>, transform_indices = @transform_7, window_bounds = array<i64: 32, 4>}, {pipeline_mode = #tpu.pipeline_mode<synchronous>, transform_indices = @transform_8, window_bounds = array<i64: 1, 4>}, {transform_indices = @transform_9, window_bounds = array<i64: 8, 4>}]} {
    %c0 = arith.constant 0 : index
    %c0_0 = arith.constant 0 : index
    %0 = vector.load %arg1[%c0, %c0_0] : memref<8x16xf32, #tpu.memory_space<vmem>>, vector<8x16xf32>
    %1 = arith.truncf %0 : vector<8x16xf32> to vector<8x16xbf16>
    %c0_1 = arith.constant 0 : index
    %c0_2 = arith.constant 0 : index
    %2 = vector.load %arg2[%c0_1, %c0_2] : memref<16x96xbf16, #tpu.memory_space<vmem>>, vector<16x96xbf16>
    %cst = arith.constant dense<0.000000e+00> : vector<8x96xf32>
    %3 = tpu.matmul %1, %2, %cst {dimension_numbers = #tpu.dot_dimension_numbers<[1], [0], [0], [1], [0, 0, 1, 1], [], []>} : vector<8x16xbf16>, vector<16x96xbf16>, vector<8x96xf32> -> vector<8x96xf32>
    %c0_3 = arith.constant 0 : index
    %c0_4 = arith.constant 0 : index
    %4 = vector.load %arg3[%c0_3, %c0_4] : memref<1x96xf32, #tpu.memory_space<vmem>>, vector<1x96xf32>
    %5 = vector.broadcast %4 : vector<1x96xf32> to vector<8x96xf32>
    %6 = arith.addf %3, %5 : vector<8x96xf32>
    %7 = vector.extract_strided_slice %6 {offsets = [0, 0], sizes = [8, 64], strides = [1, 1]} : vector<8x96xf32> to vector<8x64xf32>
    %8 = arith.negf %7 : vector<8x64xf32>
    %9 = math.exp %8 : vector<8x64xf32>
    %cst_5 = arith.constant 1.000000e+00 : f32
    %10 = vector.broadcast %cst_5 : f32 to vector<8x64xf32>
    %11 = arith.addf %10, %9 : vector<8x64xf32>
    %12 = arith.divf %10, %11 : vector<8x64xf32>
    %13 = vector.extract_strided_slice %12 {offsets = [0, 0], sizes = [8, 32], strides = [1, 1]} : vector<8x64xf32> to vector<8x32xf32>
    %14 = vector.extract_strided_slice %12 {offsets = [0, 32], sizes = [8, 32], strides = [1, 1]} : vector<8x64xf32> to vector<8x32xf32>
    %15 = vector.extract_strided_slice %6 {offsets = [0, 64], sizes = [8, 32], strides = [1, 1]} : vector<8x96xf32> to vector<8x32xf32>
    %16 = math.tanh %15 : vector<8x32xf32>
    %17 = arith.mulf %13, %16 : vector<8x32xf32>
    %18 = math.tanh %17 : vector<8x32xf32>
    %19 = arith.mulf %14, %18 : vector<8x32xf32>
    %20 = arith.truncf %19 : vector<8x32xf32> to vector<8x32xbf16>
    %c0_6 = arith.constant 0 : index
    %c0_7 = arith.constant 0 : index
    %21 = vector.load %arg4[%c0_6, %c0_7] : memref<32x96xbf16, #tpu.memory_space<vmem>>, vector<32x96xbf16>
    %cst_8 = arith.constant dense<0.000000e+00> : vector<8x96xf32>
    %22 = tpu.matmul %20, %21, %cst_8 {dimension_numbers = #tpu.dot_dimension_numbers<[1], [0], [0], [1], [0, 0, 1, 1], [], []>} : vector<8x32xbf16>, vector<32x96xbf16>, vector<8x96xf32> -> vector<8x96xf32>
    %c0_9 = arith.constant 0 : index
    %c0_10 = arith.constant 0 : index
    %23 = vector.load %arg5[%c0_9, %c0_10] : memref<1x96xf32, #tpu.memory_space<vmem>>, vector<1x96xf32>
    %24 = vector.broadcast %23 : vector<1x96xf32> to vector<8x96xf32>
    %25 = arith.addf %22, %24 : vector<8x96xf32>
    %26 = vector.extract_strided_slice %25 {offsets = [0, 0], sizes = [8, 64], strides = [1, 1]} : vector<8x96xf32> to vector<8x64xf32>
    %27 = arith.negf %26 : vector<8x64xf32>
    %28 = math.exp %27 : vector<8x64xf32>
    %cst_11 = arith.constant 1.000000e+00 : f32
    %29 = vector.broadcast %cst_11 : f32 to vector<8x64xf32>
    %30 = arith.addf %29, %28 : vector<8x64xf32>
    %31 = arith.divf %29, %30 : vector<8x64xf32>
    %32 = vector.extract_strided_slice %31 {offsets = [0, 0], sizes = [8, 32], strides = [1, 1]} : vector<8x64xf32> to vector<8x32xf32>
    %33 = vector.extract_strided_slice %31 {offsets = [0, 32], sizes = [8, 32], strides = [1, 1]} : vector<8x64xf32> to vector<8x32xf32>
    %34 = vector.extract_strided_slice %25 {offsets = [0, 64], sizes = [8, 32], strides = [1, 1]} : vector<8x96xf32> to vector<8x32xf32>
    %35 = math.tanh %34 : vector<8x32xf32>
    %36 = arith.mulf %32, %35 : vector<8x32xf32>
    %37 = math.tanh %36 : vector<8x32xf32>
    %38 = arith.mulf %33, %37 : vector<8x32xf32>
    %c0_12 = arith.constant 0 : index
    %c0_13 = arith.constant 0 : index
    %39 = vector.load %arg6[%c0_12, %c0_13] : memref<32x32xbf16, #tpu.memory_space<vmem>>, vector<32x32xbf16>
    %c0_14 = arith.constant 0 : index
    %c0_15 = arith.constant 0 : index
    %40 = vector.load %arg7[%c0_14, %c0_15] : memref<1x32xf32, #tpu.memory_space<vmem>>, vector<1x32xf32>
    %41 = arith.truncf %38 : vector<8x32xf32> to vector<8x32xbf16>
    %cst_16 = arith.constant dense<0.000000e+00> : vector<8x32xf32>
    %42 = tpu.matmul %41, %39, %cst_16 {dimension_numbers = #tpu.dot_dimension_numbers<[1], [0], [0], [1], [0, 0, 1, 1], [], []>} : vector<8x32xbf16>, vector<32x32xbf16>, vector<8x32xf32> -> vector<8x32xf32>
    %43 = vector.broadcast %40 : vector<1x32xf32> to vector<8x32xf32>
    %44 = arith.addf %42, %43 : vector<8x32xf32>
    %cst_17 = arith.constant 0.000000e+00 : f32
    %45 = vector.broadcast %cst_17 : f32 to vector<8x32xf32>
    %46 = arith.maximumf %44, %45 : vector<8x32xf32>
    %47 = arith.truncf %46 : vector<8x32xf32> to vector<8x32xbf16>
    %cst_18 = arith.constant dense<0.000000e+00> : vector<8x32xf32>
    %48 = tpu.matmul %47, %39, %cst_18 {dimension_numbers = #tpu.dot_dimension_numbers<[1], [0], [0], [1], [0, 0, 1, 1], [], []>} : vector<8x32xbf16>, vector<32x32xbf16>, vector<8x32xf32> -> vector<8x32xf32>
    %49 = vector.broadcast %40 : vector<1x32xf32> to vector<8x32xf32>
    %50 = arith.addf %48, %49 : vector<8x32xf32>
    %cst_19 = arith.constant 0.000000e+00 : f32
    %51 = vector.broadcast %cst_19 : f32 to vector<8x32xf32>
    %52 = arith.maximumf %50, %51 : vector<8x32xf32>
    %53 = arith.truncf %52 : vector<8x32xf32> to vector<8x32xbf16>
    %c0_20 = arith.constant 0 : index
    %c0_21 = arith.constant 0 : index
    %54 = vector.load %arg8[%c0_20, %c0_21] : memref<32x4xbf16, #tpu.memory_space<vmem>>, vector<32x4xbf16>
    %cst_22 = arith.constant dense<0.000000e+00> : vector<8x4xf32>
    %55 = tpu.matmul %53, %54, %cst_22 {dimension_numbers = #tpu.dot_dimension_numbers<[1], [0], [0], [1], [0, 0, 1, 1], [], []>} : vector<8x32xbf16>, vector<32x4xbf16>, vector<8x4xf32> -> vector<8x4xf32>
    %c0_23 = arith.constant 0 : index
    %c0_24 = arith.constant 0 : index
    %56 = vector.load %arg9[%c0_23, %c0_24] : memref<1x4xf32, #tpu.memory_space<vmem>>, vector<1x4xf32>
    %57 = vector.broadcast %56 : vector<1x4xf32> to vector<8x4xf32>
    %58 = arith.addf %55, %57 : vector<8x4xf32>
    %59 = arith.negf %58 : vector<8x4xf32>
    %60 = math.exp %59 : vector<8x4xf32>
    %cst_25 = arith.constant 1.000000e+00 : f32
    %61 = vector.broadcast %cst_25 : f32 to vector<8x4xf32>
    %62 = arith.addf %61, %60 : vector<8x4xf32>
    %63 = arith.divf %61, %62 : vector<8x4xf32>
    %c0_26 = arith.constant 0 : index
    %c0_27 = arith.constant 0 : index
    %64 = vector.load %arg10[%c0_26, %c0_27] : memref<8x4xf32, #tpu.memory_space<vmem>>, vector<8x4xf32>
    tpu.vector_store %arg10[%c0_26, %c0_27], %63 {strides = array<i32>} : memref<8x4xf32, #tpu.memory_space<vmem>>, vector<8x4xf32>,
    return
  }
  func.func @transform_0(%arg0: i32) -> (i32, i32) {
    %c0_i32 = arith.constant 0 : i32
    %c0_i32_0 = arith.constant 0 : i32
    return %arg0, %c0_i32 : i32, i32
  }
  func.func @transform_1(%arg0: i32) -> (i32, i32) {
    %c0_i32 = arith.constant 0 : i32
    %c0_i32_0 = arith.constant 0 : i32
    %c0_i32_1 = arith.constant 0 : i32
    return %c0_i32, %c0_i32_0 : i32, i32
  }
  func.func @transform_2(%arg0: i32) -> (i32, i32) {
    %c0_i32 = arith.constant 0 : i32
    %c0_i32_0 = arith.constant 0 : i32
    %c0_i32_1 = arith.constant 0 : i32
    return %c0_i32, %c0_i32_0 : i32, i32
  }
  func.func @transform_3(%arg0: i32) -> (i32, i32) {
    %c0_i32 = arith.constant 0 : i32
    %c0_i32_0 = arith.constant 0 : i32
    %c0_i32_1 = arith.constant 0 : i32
    return %c0_i32, %c0_i32_0 : i32, i32
  }
  func.func @transform_4(%arg0: i32) -> (i32, i32) {
    %c0_i32 = arith.constant 0 : i32
    %c0_i32_0 = arith.constant 0 : i32
    %c0_i32_1 = arith.constant 0 : i32
    return %c0_i32, %c0_i32_0 : i32, i32
  }
  func.func @transform_5(%arg0: i32) -> (i32, i32) {
    %c0_i32 = arith.constant 0 : i32
    %c0_i32_0 = arith.constant 0 : i32
    %c0_i32_1 = arith.constant 0 : i32
    return %c0_i32, %c0_i32_0 : i32, i32
  }
  func.func @transform_6(%arg0: i32) -> (i32, i32) {
    %c0_i32 = arith.constant 0 : i32
    %c0_i32_0 = arith.constant 0 : i32
    %c0_i32_1 = arith.constant 0 : i32
    return %c0_i32, %c0_i32_0 : i32, i32
  }
  func.func @transform_7(%arg0: i32) -> (i32, i32) {
    %c0_i32 = arith.constant 0 : i32
    %c0_i32_0 = arith.constant 0 : i32
    %c0_i32_1 = arith.constant 0 : i32
    return %c0_i32, %c0_i32_0 : i32, i32
  }
  func.func @transform_8(%arg0: i32) -> (i32, i32) {
    %c0_i32 = arith.constant 0 : i32
    %c0_i32_0 = arith.constant 0 : i32
    %c0_i32_1 = arith.constant 0 : i32
    return %c0_i32, %c0_i32_0 : i32, i32
  }
  func.func @transform_9(%arg0: i32) -> (i32, i32) {
    %c0_i32 = arith.constant 0 : i32
    %c0_i32_0 = arith.constant 0 : i32
    return %arg0, %c0_i32 : i32, i32
  }
}

</mosaic_0001>

<bundles_post_ra>
// kernel: tpu_custom_call.1
= control target key start
LH: loop header
LB: loop body
LE: loop exit
PB: predicated region body
PF: predicated region fallthrough
CT: control target
= control target key end

     0   :  { %14 = vsyncpa [#allocation3], 0  ;;  %s768_s0 = inlined_call_operand.hbm [shape: f32[8,16], index: 0, kind: input, shape index: {}]   ;;  %s769_s1 = inlined_call_operand.hbm [shape: bf16[16,96], index: 1, kind: input, shape index: {}]   ;;  %s770_s2 = inlined_call_operand.vmem [shape: f32[1,96], index: 2, kind: input, shape index: {}]   ;;  %s771_s3 = inlined_call_operand.vmem [shape: bf16[32,96], index: 3, kind: input, shape index: {}]   ;;  %s772_s4 = inlined_call_operand.hbm [shape: f32[1,96], index: 4, kind: input, shape index: {}]   ;;  %s773_s5 = inlined_call_operand.vmem [shape: bf16[32,32], index: 5, kind: input, shape index: {}]   ;;  %s774_s6 = inlined_call_operand.vmem [shape: f32[1,32], index: 6, kind: input, shape index: {}]   ;;  %s775_s7 = inlined_call_operand.vmem [shape: bf16[32,4], index: 7, kind: input, shape index: {}]   ;;  %s776_s8 = inlined_call_operand.vmem [shape: f32[1,4], index: 8, kind: input, shape index: {}]   ;;  %s777_s9 = inlined_call_operand.vmem [shape: f32[8,4], index: 9, kind: output, shape index: {}]  }
   0x1   :  { %15 = vsyncpa [#allocation5], 0  ;;  %s612_s30 = smov [#allocation4]   ;;  %s542_s13 = scalar_lea.hbm %s769_s1, 128 }
   0x2   :  { %s31_s10 = sshll.u32 %s612_s30, 4  ;;  %p543_p0 = scmp.ne.s32.totalorder %s769_s1, %s542_s13  ;;  %s32_s10 = int_to_ptr.vmem [resolvable:$true] %s31_s10 }
   0x3   :  { %p546_p1 = scmp.lt.u32.totalorder %s542_s13, %s769_s1 }
   0x5   :  { %p548_p2 = pnand %p546_p1, %p543_p0 }
   0x7   :  { %551 = shalt.err (!%p548_p2)
}
   0x8   :  { %s552_s18 = scalar_lea.vmem %s32_s10, 128  ;;  %p557_p4 = scmp.lt.s32.totalorder %s32_s10, %s32_s10 }
   0x9   :  { %p553_p3 = scmp.ne.s32.totalorder %s32_s10, %s552_s18  ;;  %p558_p5 = scmp.lt.s32.totalorder %s552_s18, %s552_s18 }
   0xb   :  { %p559_p6 = por %p558_p5, %p557_p4 }
   0xd   :  { %p560_p7 = pnand %p559_p6, %p553_p3 }
   0xf   :  { %563 = shalt.err (!%p560_p7)
}
  0x10   :  { %s613_s19 = smov 64   ;;  %s614_s20 = smov 4  }
  0x11   :  { %37 = dma.hbm_to_vmem [thread:$0]  %s769_s1, 128, %s32_s10, [#allocation5], %s613_s19, %s613_s19, %s614_s20  }
  0x12   :  { %s615_s23 = smov [#allocation2]   ;;  %s616_s25 = smov [#allocation6]  }
  0x13   :  { %s22_s24 = sshll.u32 %s615_s23, 4  ;;  %s48_s26 = sshll.u32 %s616_s25, 4  ;;  %s23_s24 = int_to_ptr.vmem [resolvable:$true] %s22_s24  ;;  %s49_s26 = int_to_ptr.vmem [resolvable:$true] %s48_s26 }
  0x14   :  { %s564_s29 = scalar_lea.hbm %s768_s0, 128 }
  0x15   :  { %p565_p8 = scmp.ne.s32.totalorder %s768_s0, %s564_s29  ;;  %p568_p9 = scmp.lt.u32.totalorder %s564_s29, %s768_s0 }
  0x17   :  { %p570_p10 = pnand %p568_p9, %p565_p8 }
  0x19   :  { %573 = shalt.err (!%p570_p10)
}
  0x1a   :  { %s574_s1 = scalar_lea.vmem %s23_s24, 128  ;;  %p579_p12 = scmp.lt.s32.totalorder %s23_s24, %s23_s24 }
  0x1b   :  { %p575_p11 = scmp.ne.s32.totalorder %s23_s24, %s574_s1  ;;  %p580_p13 = scmp.lt.s32.totalorder %s574_s1, %s574_s1 }
  0x1d   :  { %p581_p0 = por %p580_p13, %p579_p12 }
  0x1f   :  { %p582_p1 = pnand %p581_p0, %p575_p11 }
  0x21   :  { %585 = shalt.err (!%p582_p1)
}
  0x22   :  { %25 = dma.hbm_to_vmem [thread:$0]  %s768_s0, 128, %s23_s24, [#allocation3]  }
  0x23   :  { %s586_s17 = scalar_lea.hbm %s772_s4, 16 }
  0x24   :  { %p587_p2 = scmp.ne.s32.totalorder %s772_s4, %s586_s17  ;;  %p590_p3 = scmp.lt.u32.totalorder %s586_s17, %s772_s4 }
  0x26   :  { %p592_p4 = pnand %p590_p3, %p587_p2 }
  0x28   :  { %595 = shalt.err (!%p592_p4)
}
  0x29   :  { %s596_s23 = scalar_lea.vmem %s49_s26, 16  ;;  %s600_s25 = scalar_lea.vmem %s49_s26, 32 }
  0x2a   :  { %p597_p5 = scmp.ne.s32.totalorder %s49_s26, %s596_s23  ;;  %p601_p6 = scmp.lt.s32.totalorder %s49_s26, %s49_s26 }
  0x2b   :  { %p602_p7 = scmp.lt.s32.totalorder %s600_s25, %s596_s23 }
  0x2d   :  { %p603_p8 = por %p602_p7, %p601_p6 }
  0x2f   :  { %p604_p9 = pnand %p603_p8, %p597_p5 }
  0x31   :  { %607 = shalt.err (!%p604_p9)
}
  0x32   :  { %51 = dma.hbm_to_vmem [thread:$0]  %s772_s4, 16, %s49_s26, [#allocation5]  }
  0x33   :  { %608 = dma.done.wait [#allocation3], 128  }
  0x34   :  { %609 = vsyncadd [#allocation3], 4294967168 }
  0x35   :  { %610 = dma.done.wait [#allocation5], 144  }
  0x36   :  { %611 = vsyncadd [#allocation5], 4294967152  ;;  %v617_v0 = vmov 0.0   ;;  %vm618_vm0 = vmmov 0   ;;  %v515_v1 = vld [vmem:[#allocation4] sm:$0xff]   ;;  %v70_v2 = vld [vmem:[#allocation2] sm:$0xff] }
  0x37   :  { %468 = vmatprep.subr.bf16.mxu0 %v617_v0  ;;  %470 = vmatprep.mubr.msk.bf16.mxu0 %vm618_vm0, %v617_v0  ;;  %vm87_vm1 = vcmask 130048   ;;  %v71_v3 = vpack.c.bf16 %v70_v2, %v70_v2  ;;  %v435_v4 = vld [vmem:[%s770_s2] ss:$0 sm:$0xff]  ;;  %v517_v18 = vld [vmem:[%s771_s3 + $0x8] sm:$0xff]   ;;  %s619_s30 = smov 32   ;;  %s620_s11 = smov 96  }
  0x38   :  { %474 = vmatprep.subr.bf16.mxu1 %v617_v0  ;;  %478 = vmatprep.mubr.msk.bf16.mxu1 %vm618_vm0, %v617_v0  ;;  %v516_v17 = vld [vmem:[%s771_s3] sm:$0xff]   ;;  %vm176_vm2 = vcmask 261120   ;;  %v439_v24 = vld [vmem:[#allocation6] ss:$0 sm:$0xff]  ;;  %v519_v38 = vld [vmem:[%s773_s5 + $0x8] sm:$0xff]   ;;  %vm427_vm3 = vcmask 31744  }
  0x39   :  { %469 = vmatpush3.bf16.msra.mxu0 %v515_v1  ;;  %475 = vmatpush3.bf16.msra.mxu1 %v516_v17  ;;  %v518_v37 = vld [vmem:[%s773_s5] sm:$0xff]   ;;  %v521_v53 = vld [vmem:[%s775_s7 + $0x8] sm:$0xff]  }
  0x3a   :  { %482 = vmatprep.subr.bf16.mxu0 %v617_v0  ;;  %476 = vmatprep.subr.bf16.mxu1 %v617_v0  ;;  %v520_v44 = vld [vmem:[%s775_s7] sm:$0xff]  }
  0x3b   :  { %v444_v45 = vld [vmem:[%s774_s6] ss:$0 sm:$0xff] }
  0x3c   :  { %471 = vmatmul.mubr.msk.bf16.vlgmr.msra.gmra.mrb[0].mxu0 %vm87_vm1, %v71_v3  ;;  %v449_v61 = vld [vmem:[%s776_s8] ss:$0 sm:$0xff] }
  0x3d   :  { %486 = vmatprep.mubr.msk.bf16.mxu0 %vm618_vm0, %v617_v0  ;;  %477 = vmatpush3.bf16.msra.mxu1 %v517_v18 }
  0x3e   :  { %490 = vmatprep.subr.bf16.mxu1 %v617_v0  ;;  %483 = vmatpush3.bf16.msra.mxu0 %v518_v37 }
  0x3f   :  { %484 = vmatprep.subr.bf16.mxu0 %v617_v0 }
  0x42   :  { %485 = vmatpush3.bf16.msra.mxu0 %v519_v38 }
  0x43   :  { %498 = vmatprep.subr.bf16.mxu0 %v617_v0 }
 0x10f   :  { %v125_v5 = vpop.f32.mrb[0].mxu0 }
 0x110   :  { %v126_v6 = vadd.f32 %v435_v4, %v125_v5  ;;  %v472_v7 = vpop.f32.mrb[1].mxu0 }
 0x111   :  { %v128_v8 = vpop.f32.mrb[2].mxu0 }
 0x112   :  { %v473_v9 = vpop.f32.mrb[3].mxu0  ;;  %522 = vtanh.f32 %v126_v6  ;;  %v438_v11 = vmul.f32 -1.442695, %v126_v6 }
 0x114   :  { %524 = vpow2.f32 %v438_v11 }
 0x11c   :  { %v523_v10 = vpop.eup %522 }
 0x11d   :  { %139 = vrot.lane.b32.xlu0 %v523_v10, %s613_s19 }
 0x11e   :  { %v525_v12 = vpop.eup %524 }
 0x11f   :  { %v134_v13 = vadd.f32 1.0, %v525_v12 }
 0x121   :  { %526 = vrcp.f32 %v134_v13 }
 0x12b   :  { %v527_v14 = vpop.eup %526 }
 0x18f   :  { %v140_v15 = vpop.permute.xlu0 %139 }
 0x190   :  { %v142_v16 = vmul.f32 %v527_v14, %v140_v15 }
 0x192   :  { %528 = vtanh.f32 %v142_v16 }
 0x19c   :  { %v529_v19 = vpop.eup %528 }
 0x19d   :  { %145 = vrot.lane.b32.xlu0 %v529_v19, %s619_s30 }
 0x20f   :  { %v146_v20 = vpop.permute.xlu0 %145 }
 0x210   :  { %v148_v21 = vmul.f32 %v527_v14, %v146_v20 }
 0x212   :  { %v149_v22 = vpack.c.bf16 %v148_v21, %v148_v21 }
 0x214   :  { %162 = vrot.lane.b32.xlu1 %v149_v22, %s620_s11 }
 0x286   :  { %v163_v23 = vpop.permute.xlu1 %162 }
 0x287   :  { %479 = vmatmul.mubr.msk.bf16.vlgmr.msra.gmra.mrb[0].mxu1 %vm176_vm2, %v163_v23 }
 0x288   :  { %494 = vmatprep.mubr.msk.bf16.mxu1 %vm618_vm0, %v617_v0  ;;  %491 = vmatpush3.bf16.msra.mxu1 %v518_v37 }
 0x289   :  { %492 = vmatprep.subr.bf16.mxu1 %v617_v0 }
 0x28c   :  { %493 = vmatpush3.bf16.msra.mxu1 %v519_v38 }
 0x35a   :  { %v214_v25 = vpop.f32.mrb[0].mxu1 }
 0x35b   :  { %v215_v26 = vadd.f32 %v439_v24, %v214_v25  ;;  %v480_v27 = vpop.f32.mrb[1].mxu1 }
 0x35c   :  { %v217_v28 = vpop.f32.mrb[2].mxu1 }
 0x35d   :  { %530 = vtanh.f32 %v215_v26  ;;  %v481_v29 = vpop.f32.mrb[3].mxu1  ;;  %v443_v31 = vmul.f32 -1.442695, %v215_v26 }
 0x35f   :  { %532 = vpow2.f32 %v443_v31 }
 0x367   :  { %v531_v30 = vpop.eup %530 }
 0x368   :  { %228 = vrot.lane.b32.xlu1 %v531_v30, %s613_s19 }
 0x369   :  { %v533_v32 = vpop.eup %532 }
 0x36a   :  { %v223_v33 = vadd.f32 1.0, %v533_v32 }
 0x36c   :  { %534 = vrcp.f32 %v223_v33 }
 0x376   :  { %v535_v34 = vpop.eup %534 }
 0x3da   :  { %v229_v35 = vpop.permute.xlu1 %228 }
 0x3db   :  { %v231_v36 = vmul.f32 %v535_v34, %v229_v35 }
 0x3dd   :  { %536 = vtanh.f32 %v231_v36 }
 0x3e7   :  { %v537_v39 = vpop.eup %536 }
 0x3e8   :  { %234 = vrot.lane.b32.xlu0 %v537_v39, %s619_s30 }
 0x45a   :  { %v235_v40 = vpop.permute.xlu0 %234 }
 0x45b   :  { %v237_v41 = vmul.f32 %v535_v34, %v235_v40 }
 0x45d   :  { %v243_v42 = vpack.c.bf16 %v237_v41, %v237_v41 }
 0x45f   :  { %251 = vrot.lane.b32.xlu1 %v243_v42, %s620_s11 }
 0x4d1   :  { %v252_v43 = vpop.permute.xlu1 %251 }
 0x4d2   :  { %487 = vmatmul.mubr.msk.bf16.vlgmr.msra.gmra.mrb[4].mxu0 %vm176_vm2, %v252_v43 }
 0x4d3   :  { %502 = vmatprep.mubr.msk.bf16.mxu0 %vm618_vm0, %v617_v0  ;;  %499 = vmatpush3.bf16.msra.mxu0 %v520_v44 }
 0x4d4   :  { %500 = vmatprep.subr.bf16.mxu0 %v617_v0 }
 0x4d7   :  { %501 = vmatpush3.bf16.msra.mxu0 %v521_v53 }
 0x5a5   :  { %v302_v46 = vpop.f32.mrb[4].mxu0 }
 0x5a6   :  { %v303_v47 = vadd.f32 %v444_v45, %v302_v46  ;;  %v488_v48 = vpop.f32.mrb[5].mxu0 }
 0x5a7   :  { %v305_v49 = vpop.f32.mrb[6].mxu0 }
 0x5a8   :  { %v308_v50 = vmax.f32 %v303_v47, 0.0  ;;  %v489_v51 = vpop.f32.mrb[7].mxu0 }
 0x5aa   :  { %v309_v52 = vpack.c.bf16 %v308_v50, %v308_v50 }
 0x5ac   :  { %495 = vmatmul.mubr.msk.bf16.vlgmr.msra.gmra.mrb[4].mxu1 %vm176_vm2, %v309_v52 }
 0x67f   :  { %v347_v54 = vpop.f32.mrb[4].mxu1 }
 0x680   :  { %v348_v55 = vadd.f32 %v444_v45, %v347_v54  ;;  %v496_v56 = vpop.f32.mrb[5].mxu1 }
 0x681   :  { %v350_v57 = vpop.f32.mrb[6].mxu1 }
 0x682   :  { %v353_v58 = vmax.f32 %v348_v55, 0.0  ;;  %v497_v59 = vpop.f32.mrb[7].mxu1 }
 0x684   :  { %v354_v60 = vpack.c.bf16 %v353_v58, %v353_v58 }
 0x686   :  { %503 = vmatmul.mubr.msk.bf16.vlgmr.msra.gmra.mrb[8].mxu0 %vm176_vm2, %v354_v60 }
 0x759   :  { %v415_v62 = vpop.f32.mrb[8].mxu0 }
 0x75a   :  { %v416_v63 = vadd.f32 %v449_v61, %v415_v62  ;;  %v504_v0 = vpop.f32.mrb[9].mxu0 }
 0x75b   :  { %v418_v1 = vpop.f32.mrb[10].mxu0 }
 0x75c   :  { %v453_v2 = vmul.f32 -1.442695, %v416_v63  ;;  %v505_v3 = vpop.f32.mrb[11].mxu0 }
 0x75e   :  { %538 = vpow2.f32 %v453_v2 }
 0x768   :  { %v539_v4 = vpop.eup %538 }
 0x769   :  { %v424_v5 = vadd.f32 1.0, %v539_v4 }
 0x76b   :  { %540 = vrcp.f32 %v424_v5 }
 0x775   :  { %v541_v6 = vpop.eup %540 }
 0x776   :  { %428 = vst.msk [vmem:[%s777_s9] sm:$0xff] %vm427_vm3, %v541_v6 }
 0x777   :  { %433 = vsyncpa [#allocation3], 1 }
 0x778   :  { %434 = vsyncpa [#allocation5], 1 }

</bundles_post_ra>
